<compile_context>
chip_gen: v7x
topology: tpu7x:2x2x1
jax: 0.10.0
libtpu: 0.0.40
codegen_flags: <defaults>
</compile_context>

<pallas_src>
import jax
import jax.numpy as jnp
from jax.experimental import pallas as pl
from jax.experimental.pallas import tpu as pltpu

_BIG = 1e8  # pt4nlp's _big_number sentinel used for masked max pooling


def _round_up(a, m):
    return (a + m - 1) // m * m


def _make_kernel(TB, D, H, W, S, Lp_pad, N, N_pad):
    def kernel(x_ref, w_ref, bounds_ref, bias_ref, o_ref):
        # --- conv: one wide MXU matmul covering all W taps (N = W*H) -------
        # x_ref is already the flat (TB*Lp_pad, D) bf16 slab (wrapper reshape).
        y = jnp.dot(x_ref[...], w_ref[...],
                    preferred_element_type=jnp.float32)   # (TB*Lp_pad, W*H) f32

        # "same"-padded 1-D conv: tap k contributes at time offset W-1-k.
        # Assemble with sublane rolls on the flat 2-D array: rows with
        # time >= L are zero (wrapper padding), so wraparound across batch
        # boundaries (and around the whole slab) brings exact zeros.
        conv = None
        for k in range(W):
            shift = W - 1 - k
            yk = y[:, k * H:(k + 1) * H]                  # (TB*Lp_pad, H)
            if shift:
                yk = pltpu.roll(yk, shift, 0)             # XLU sublane rotate
            conv = yk if conv is None else conv + yk

        # Bias pre-pooling (matches PyTorch exactly, incl. empty segments).
        conv = conv + bias_ref[...]                       # (1, H) broadcast
        conv = conv.reshape(TB, Lp_pad, H)                # sublane-aligned split

        # --- segment-wise masked max pooling, vectorised over the tile -----
        bnd = bounds_ref[...]                             # (TB, S+2, 1) i32
        t_idx = jax.lax.broadcasted_iota(jnp.int32, (TB, Lp_pad, H), 1)

        pieces = []
        # NOTE: static unroll is fine for tiny S; switch to
        # lax.fori_loop(..., unroll=True) + per-segment stores for large S
        # to bound vreg live ranges.
        for j in range(S + 1):
            left = bnd[:, j:j + 1, :]                     # (TB, 1, 1)
            right = bnd[:, j + 1:j + 2, :]                # (TB, 1, 1)
            mask = (t_idx >= left) & (t_idx < right)      # (TB, Lp_pad, H)
            pieces.append(jnp.max(jnp.where(mask, conv, -_BIG), axis=1))

        if N_pad > N:                                     # lane-dense padding
            pieces.append(jnp.zeros((TB, N_pad - N), jnp.float32))
        o_ref[...] = jnp.concatenate(pieces, axis=1)      # single unmasked vst

    return kernel


def multi_pooling_cnn_encoder(inputs, position, weight, bias, window_size,
                              *, batch_tile=None,
                              compute_dtype=jnp.bfloat16,
                              target_tile_bytes=1 << 20,
                              min_grid_steps=2):
    """inputs: (B, L, D) f32; position: (B, S) int; weight: (H, 1, W, D);
    bias: (H,). Returns (B, (S+1)*H) f32 — max pooling over the S+1 segments
    of the "same"-padded conv output (lengths=None path; dropout is
    inference-mode identity)."""
    # TODO(synk): training-mode dropout (p=0.5) and the explicit `lengths`
    # masking path are not implemented (lengths=None only).
    B, L, D = inputs.shape
    H = weight.shape[0]
    W = window_size
    if position.ndim == 1:
        position = position[:, None]
    S = position.shape[1]
    Lp = L + W - 1
    Lp_pad = _round_up(Lp, 8)            # sublane-aligned conv time axis
    N = (S + 1) * H
    N_pad = _round_up(N, 128)            # lane-dense output

    # --- batch tile selection: ~target_tile_bytes of bf16 x per step, but
    # keep at least `min_grid_steps` grid steps when the batch allows it.
    row_bytes = Lp_pad * D * jnp.dtype(compute_dtype).itemsize
    tb = max(1, target_tile_bytes // row_bytes)
    if batch_tile is not None:
        tb = min(tb, batch_tile)
    tb = min(tb, max(1, -(-B // min_grid_steps)))
    TB = _round_up(tb, 8)
    Bp = _round_up(B, TB)

    # --- operand prep (layout plumbing in the wrapper, not the kernel) -----
    x = jnp.pad(inputs.astype(compute_dtype),
                ((0, Bp - B), (0, Lp_pad - L), (0, 0)))
    x2 = x.reshape(Bp * Lp_pad, D)                        # flat MXU operand

    # Conv2d weight (H, 1, W, D) -> (D, W*H); column block k holds tap k.
    w_flat = jnp.transpose(weight[:, 0, :, :], (2, 1, 0)).reshape(D, W * H)
    w_flat = w_flat.astype(compute_dtype)

    bias_row = bias.astype(jnp.float32).reshape(1, H)

    # Segment boundaries per row: [0, pos_0+W-1, ..., pos_{S-1}+W-1, Lp],
    # shaped (Bp, S+2, 1) so the kernel compares (TB,1,1) bounds against the
    # (TB, Lp_pad, H) time iota; padded times t >= Lp are never selected.
    position = jnp.asarray(position, jnp.int32)
    if Bp != B:
        position = jnp.pad(position, ((0, Bp - B), (0, 0)))
    bounds = jnp.concatenate(
        [jnp.zeros((Bp, 1), jnp.int32),
         position + (W - 1),
         jnp.full((Bp, 1), Lp, jnp.int32)], axis=1)[..., None]  # (Bp, S+2, 1)

    kernel = _make_kernel(TB, D, H, W, S, Lp_pad, N, N_pad)

    # Rough per-step VMEM working set (double-buffered x/out + f32
    # intermediates), with headroom, clamped to be v7x (64 MiB) safe.
    est = (2 * TB * Lp_pad * D * 2            # x double buffer
           + 2 * D * W * H * 2                # weight double buffer
           + 2 * TB * N_pad * 4               # out double buffer
           + TB * Lp_pad * W * H * 4          # y
           + 3 * TB * Lp_pad * H * 4          # conv + mask/select temporaries
           + (1 << 20))                       # slack
    vmem_limit = int(min(max(2 * est, 16 << 20), 48 << 20))

    grid_spec = pltpu.PrefetchScalarGridSpec(
        num_scalar_prefetch=0,
        grid=(Bp // TB,),
        in_specs=[
            pl.BlockSpec((TB * Lp_pad, D), lambda b: (b, 0)),
            pl.BlockSpec((D, W * H), lambda b: (0, 0)),
            pl.BlockSpec((TB, S + 2, 1), lambda b: (b, 0, 0)),
            pl.BlockSpec((1, H), lambda b: (0, 0)),
        ],
        out_specs=pl.BlockSpec((TB, N_pad), lambda b: (b, 0)),
    )

    out = pl.pallas_call(
        kernel,
        out_shape=jax.ShapeDtypeStruct((Bp, N_pad), jnp.float32),
        grid_spec=grid_spec,
        compiler_params=pltpu.CompilerParams(
            dimension_semantics=("parallel",),
            vmem_limit_bytes=vmem_limit),
    )(x2, w_flat, bounds, bias_row)

    return out[:B, :N]


def _reference(inputs, position, weight, bias, W, compute_dtype):
    """Pure-JAX reference mirroring the PyTorch forward (eval mode), using the
    same bf16-representable operands as the kernel."""
    B, L, D = inputs.shape
    H = weight.shape[0]
    S = position.shape[1]
    Lp = L + W - 1
    x = inputs.astype(compute_dtype).astype(jnp.float32)
    w_kdh = jnp.transpose(weight[:, 0, :, :], (1, 2, 0)).astype(
        compute_dtype).astype(jnp.float32)                # (W, D, H)
    conv = jnp.zeros((B, Lp, H), jnp.float32)
    for k in range(W):
        shift = W - 1 - k
        conv = conv.at[:, shift:shift + L, :].add(
            jnp.einsum("bld,dh->blh", x, w_kdh[k]))
    conv = conv + bias[None, None, :]
    bounds = jnp.concatenate(
        [jnp.zeros((B, 1), jnp.int32),
         position.astype(jnp.int32) + (W - 1),
         jnp.full((B, 1), Lp, jnp.int32)], axis=1)
    t = jnp.arange(Lp)[None, :]
    outs = []
    for j in range(S + 1):
        mask = (t >= bounds[:, j:j + 1]) & (t < bounds[:, j + 1:j + 2])
        outs.append(jnp.max(jnp.where(mask[:, :, None], conv, -_BIG), axis=1))
    return jnp.concatenate(outs, axis=1)


if __name__ == "__main__":
    key = jax.random.PRNGKey(0)
    # batch, len, input_size, hidden, window, split points
    B, L, D, H, W, S = 16, 8, 32, 32, 3, 1
    k1, k2, k3, k4 = jax.random.split(key, 4)

    inputs = jax.random.normal(k1, (B, L, D), jnp.float32)
    position = jax.random.randint(k2, (B, S), 0, L)

    # Deterministic xavier_uniform_ init for the Conv2d weight (H, 1, W, D),
    # default PyTorch init for bias (uniform +-1/sqrt(fan_in)).
    fan_in = 1 * W * D
    fan_out = H * W * D
    w_bound = (6.0 / (fan_in + fan_out)) ** 0.5
    weight = jax.random.uniform(k3, (H, 1, W, D), jnp.float32, -w_bound, w_bound)
    b_bound = 1.0 / (fan_in ** 0.5)
    bias = jax.random.uniform(k4, (H,), jnp.float32, -b_bound, b_bound)

    out = multi_pooling_cnn_encoder(inputs, position, weight, bias, W)
    out = jax.block_until_ready(out)

    ref = _reference(inputs, position, weight, bias, W, jnp.bfloat16)
    assert out.shape == (B, (S + 1) * H)
    assert jnp.allclose(out, ref, atol=1e-3, rtol=1e-3), "mismatch vs reference"
    print("KERNEL_OK")
</pallas_src>

<mosaic_0001>
module attributes {stable_mosaic.version = 11 : i64} {
  func.func @kernel(%arg0: i32, %arg1: memref<128x32xbf16, #tpu.memory_space<vmem>>, %arg2: memref<32x96xbf16, #tpu.memory_space<vmem>>, %arg3: memref<8x3x1xi32, #tpu.memory_space<vmem>>, %arg4: memref<1x32xf32, #tpu.memory_space<vmem>>, %arg5: memref<8x128xf32, #tpu.memory_space<vmem>>) attributes {dimension_semantics = [#tpu.dimension_semantics<parallel>], iteration_bounds = array<i64: 2>, scalar_prefetch = 0 : i64, scratch_operands = 0 : i64, tpu.core_type = #tpu.core_type<tc>, window_params = [{transform_indices = @transform_0, window_bounds = array<i64: 128, 32>}, {pipeline_mode = #tpu.pipeline_mode<synchronous>, transform_indices = @transform_1, window_bounds = array<i64: 32, 96>}, {transform_indices = @transform_2, window_bounds = array<i64: 8, 3, 1>}, {pipeline_mode = #tpu.pipeline_mode<synchronous>, transform_indices = @transform_3, window_bounds = array<i64: 1, 32>}, {transform_indices = @transform_4, window_bounds = array<i64: 8, 128>}]} {
    %c0 = arith.constant 0 : index
    %c0_0 = arith.constant 0 : index
    %0 = vector.load %arg1[%c0, %c0_0] : memref<128x32xbf16, #tpu.memory_space<vmem>>, vector<128x32xbf16>
    %c0_1 = arith.constant 0 : index
    %c0_2 = arith.constant 0 : index
    %1 = vector.load %arg2[%c0_1, %c0_2] : memref<32x96xbf16, #tpu.memory_space<vmem>>, vector<32x96xbf16>
    %cst = arith.constant dense<0.000000e+00> : vector<128x96xf32>
    %2 = tpu.matmul %0, %1, %cst {dimension_numbers = #tpu.dot_dimension_numbers<[1], [0], [0], [1], [0, 0, 1, 1], [], []>} : vector<128x32xbf16>, vector<32x96xbf16>, vector<128x96xf32> -> vector<128x96xf32>
    %3 = vector.extract_strided_slice %2 {offsets = [0, 0], sizes = [128, 32], strides = [1, 1]} : vector<128x96xf32> to vector<128x32xf32>
    %c2_i32 = arith.constant 2 : i32
    %4 = tpu.dynamic_rotate %3 by %c2_i32 dim 0 : vector<128x32xf32>, i32 -> vector<128x32xf32>
    %5 = vector.extract_strided_slice %2 {offsets = [0, 32], sizes = [128, 32], strides = [1, 1]} : vector<128x96xf32> to vector<128x32xf32>
    %c1_i32 = arith.constant 1 : i32
    %6 = tpu.dynamic_rotate %5 by %c1_i32 dim 0 : vector<128x32xf32>, i32 -> vector<128x32xf32>
    %7 = arith.addf %4, %6 : vector<128x32xf32>
    %8 = vector.extract_strided_slice %2 {offsets = [0, 64], sizes = [128, 32], strides = [1, 1]} : vector<128x96xf32> to vector<128x32xf32>
    %9 = arith.addf %7, %8 : vector<128x32xf32>
    %c0_3 = arith.constant 0 : index
    %c0_4 = arith.constant 0 : index
    %10 = vector.load %arg4[%c0_3, %c0_4] : memref<1x32xf32, #tpu.memory_space<vmem>>, vector<1x32xf32>
    %11 = vector.broadcast %10 : vector<1x32xf32> to vector<128x32xf32>
    %12 = arith.addf %9, %11 : vector<128x32xf32>
    %13 = vector.shape_cast %12 : vector<128x32xf32> to vector<8x16x32xf32>
    %c0_5 = arith.constant 0 : index
    %c0_6 = arith.constant 0 : index
    %c0_7 = arith.constant 0 : index
    %14 = vector.load %arg3[%c0_5, %c0_6, %c0_7] : memref<8x3x1xi32, #tpu.memory_space<vmem>>, vector<8x3x1xi32>
    %15 = tpu.iota {dimensions = array<i32: 1>} : vector<8x16x32xi32>
    %16 = vector.extract_strided_slice %14 {offsets = [0, 0, 0], sizes = [8, 1, 1], strides = [1, 1, 1]} : vector<8x3x1xi32> to vector<8x1x1xi32>
    %17 = vector.extract_strided_slice %14 {offsets = [0, 1, 0], sizes = [8, 1, 1], strides = [1, 1, 1]} : vector<8x3x1xi32> to vector<8x1x1xi32>
    %18 = vector.broadcast %16 : vector<8x1x1xi32> to vector<8x16x32xi32>
    %19 = arith.cmpi sge, %15, %18 : vector<8x16x32xi32>
    %20 = vector.broadcast %17 : vector<8x1x1xi32> to vector<8x16x32xi32>
    %21 = arith.cmpi slt, %15, %20 : vector<8x16x32xi32>
    %22 = arith.andi %19, %21 : vector<8x16x32xi1>
    %cst_8 = arith.constant -1.000000e+08 : f32
    %23 = vector.broadcast %cst_8 : f32 to vector<8x16x32xf32>
    %24 = arith.select %22, %13, %23 : vector<8x16x32xi1>, vector<8x16x32xf32>
    %cst_9 = arith.constant dense<0xFF800000> : vector<8x32xf32>
    %25 = vector.multi_reduction <maximumf>, %24, %cst_9 [1] : vector<8x16x32xf32> to vector<8x32xf32>
    %26 = vector.extract_strided_slice %14 {offsets = [0, 1, 0], sizes = [8, 1, 1], strides = [1, 1, 1]} : vector<8x3x1xi32> to vector<8x1x1xi32>
    %27 = vector.extract_strided_slice %14 {offsets = [0, 2, 0], sizes = [8, 1, 1], strides = [1, 1, 1]} : vector<8x3x1xi32> to vector<8x1x1xi32>
    %28 = vector.broadcast %26 : vector<8x1x1xi32> to vector<8x16x32xi32>
    %29 = arith.cmpi sge, %15, %28 : vector<8x16x32xi32>
    %30 = vector.broadcast %27 : vector<8x1x1xi32> to vector<8x16x32xi32>
    %31 = arith.cmpi slt, %15, %30 : vector<8x16x32xi32>
    %32 = arith.andi %29, %31 : vector<8x16x32xi1>
    %cst_10 = arith.constant -1.000000e+08 : f32
    %33 = vector.broadcast %cst_10 : f32 to vector<8x16x32xf32>
    %34 = arith.select %32, %13, %33 : vector<8x16x32xi1>, vector<8x16x32xf32>
    %cst_11 = arith.constant dense<0xFF800000> : vector<8x32xf32>
    %35 = vector.multi_reduction <maximumf>, %34, %cst_11 [1] : vector<8x16x32xf32> to vector<8x32xf32>
    %cst_12 = arith.constant 0.000000e+00 : f32
    %36 = vector.broadcast %cst_12 : f32 to vector<8x64xf32>
    %37 = tpu.concatenate %25, %35, %36 in 1 : vector<8x32xf32>, vector<8x32xf32>, vector<8x64xf32> -> vector<8x128xf32>
    %c0_13 = arith.constant 0 : index
    %c0_14 = arith.constant 0 : index
    %38 = vector.load %arg5[%c0_13, %c0_14] : memref<8x128xf32, #tpu.memory_space<vmem>>, vector<8x128xf32>
    tpu.vector_store %arg5[%c0_13, %c0_14], %37 {strides = array<i32>} : memref<8x128xf32, #tpu.memory_space<vmem>>, vector<8x128xf32>,
    return
  }
  func.func @transform_0(%arg0: i32) -> (i32, i32) {
    %c0_i32 = arith.constant 0 : i32
    %c0_i32_0 = arith.constant 0 : i32
    return %arg0, %c0_i32 : i32, i32
  }
  func.func @transform_1(%arg0: i32) -> (i32, i32) {
    %c0_i32 = arith.constant 0 : i32
    %c0_i32_0 = arith.constant 0 : i32
    %c0_i32_1 = arith.constant 0 : i32
    return %c0_i32, %c0_i32_0 : i32, i32
  }
  func.func @transform_2(%arg0: i32) -> (i32, i32, i32) {
    %c0_i32 = arith.constant 0 : i32
    %c0_i32_0 = arith.constant 0 : i32
    %c0_i32_1 = arith.constant 0 : i32
    return %arg0, %c0_i32, %c0_i32_0 : i32, i32, i32
  }
  func.func @transform_3(%arg0: i32) -> (i32, i32) {
    %c0_i32 = arith.constant 0 : i32
    %c0_i32_0 = arith.constant 0 : i32
    %c0_i32_1 = arith.constant 0 : i32
    return %c0_i32, %c0_i32_0 : i32, i32
  }
  func.func @transform_4(%arg0: i32) -> (i32, i32) {
    %c0_i32 = arith.constant 0 : i32
    %c0_i32_0 = arith.constant 0 : i32
    return %arg0, %c0_i32 : i32, i32
  }
}

</mosaic_0001>

<bundles_post_ra>
// kernel: tpu_custom_call.1
= control target key start
LH: loop header
LB: loop body
LE: loop exit
PB: predicated region body
PF: predicated region fallthrough
CT: control target
= control target key end

     0   :  { %9 = vsyncpa [#allocation3], 0  ;;  %s2488_s0 = inlined_call_operand.vmem [shape: bf16[256,32], index: 0, kind: input, shape index: {}]   ;;  %s2489_s1 = inlined_call_operand.vmem [shape: bf16[32,96], index: 1, kind: input, shape index: {}]   ;;  %s2490_s2 = inlined_call_operand.vmem [shape: s32[16,3,1], index: 2, kind: input, shape index: {}]   ;;  %s2491_s3 = inlined_call_operand.vmem [shape: f32[1,32], index: 3, kind: input, shape index: {}]   ;;  %s2492_s4 = inlined_call_operand.hbm [shape: f32[16,128], index: 4, kind: output, shape index: {}]  }
   0x1   :  { %11 = vsyncpa [#allocation3 + $0x1], 0  ;;  %s1384_s15 = smov 0   ;;  %s1386_s16 = smov 0  }
   0x2   :  { %s1388_s17 = smov 0   ;;  %s1390_s18 = smov 0  }
   0x3 LB: > { %s1405_s19 = sadd.s32 4294967295, %s1353_s18   ;;  %s1125_s20 = sadd.s32 4294967294, %s1353_s18   ;;  %s1353_s18 = sphi %s1390_s18, %s2705_s18   ;;  %s1349_s17 = sphi %s1388_s17, %s2704_s17   ;;  %s1345_s16 = sphi %s1386_s16, %s2703_s16   ;;  %s1341_s15 = sphi %s1384_s15, %s2702_s15  }
   0x4   : > { %s1409_s21 = sadd.s32 1, %s1353_s18   ;;  %s118_s22 = sadd.s32 1, %s1349_s17 }
   0x5   : > { %s115_s23 = ssub.s32 %s1353_s18, %s1409_s21  ;;  %p128_p0 = scmp.ne.s32.totalorder %s1349_s17, %s1345_s16 }
   0x6   : > { %p116_p1 = scmp.eq.s32.totalorder %s115_s23, 0  ;;  %p129_p2 = scmp.eq.s32.totalorder %s1405_s19, 1 }
   0x7   : > { %p134_p3 = scmp.ne.s32.totalorder %s1345_s16, %s1341_s15  ;;  %p135_p4 = scmp.eq.s32.totalorder %s1125_s20, 1 }
   0x8   : > { %s1420_s24 = scalar_select %p116_p1, %s1349_s17, %s118_s22  }
   0x9   : > { %p1422_p5 = por %p129_p2, %p128_p0  ;;  %p1426_p6 = por %p135_p4, %p134_p3 }
   0xa   : > { %p1128_p7 = scmp.ge.s32.totalorder %s1353_s18, 1  ;;  %p177_p8 = scmp.lt.s32.totalorder %s1353_s18, 3 }
   0xc   : > { %p178_p9 = pnand %p1128_p7, %p177_p8 }
   0xe   : > { %181 = sbr.rel (%p178_p9) target bundleno = 595 (0x253), region = 36 }
  0x15   : > { %v1281_v0 = vld [vmem:[%s2489_s1] sm:$0xff]   ;;  %s1130_s29 = sshll.u32 %s1405_s19, 4  ;;  %v1282_v1 = vld [vmem:[%s2489_s1 + $0x8] sm:$0xff]   ;;  %vm2493_vm0 = vcmask 261120   ;;  %s1132_s10 = sshll.u32 %s1405_s19, 3  ;;  %v431_v34 = vlaneseq }
  0x16   : > { %p209_p10 = scmp.lt.s32.totalorder %s1130_s29, 31  ;;  %1167 = vmatprep.subr.bf16.mxu0 %v1281_v0  ;;  %1187 = vmatprep.subr.bf16.mxu1 %v1281_v0  ;;  %p215_p11 = scmp.lt.s32.totalorder %s1132_s10, 15 }
  0x17   : > { %1168 = vmatpush3.bf16.msra.mxu0 %v1281_v0  ;;  %1189 = vmatpush3.bf16.msra.mxu1 %v1281_v0  ;;  %v1454_v35 = vshrl.u32 %v431_v34, 7  ;;  %s1355_s20 = smov 96   ;;  %s1356_s22 = smov 64  }
  0x18   : > { %s2707_s29 = smov (!%p209_p10, %s1130_s29), 31  ;;  %1169 = vmatprep.subr.bf16.mxu0 %v1282_v1  ;;  %1188 = vmatprep.subr.bf16.mxu1 %v1282_v1  ;;  %s2709_s10 = smov (!%p215_p11, %s1132_s10), 15 }
  0x19   : > { %s1131_s6 = sshll.u32 %s2707_s29, 2  ;;  %s1133_s11 = sshll.u32 %s2709_s10, 2  ;;  %vm433_vm1 = vcmp.lt.s32.totalorder %v1454_v35, 2 }
  0x1a   : > { %s212_s9 = scalar_lea.vmem %s2488_s0, %s1131_s6  ;;  %s218_s14 = scalar_lea.vmem %s2490_s2, %s1133_s11 }
  0x1b   : > { %1170 = vmatpush3.bf16.msra.mxu0 %v1282_v1  ;;  %1190 = vmatpush3.bf16.msra.mxu1 %v1282_v1  ;;  %v1283_v2 = vld [vmem:[%s212_s9] sm:$0xff]   ;;  %v1285_v4 = vld [vmem:[%s212_s9 + $0x8] sm:$0xff]   ;;  %v1287_v6 = vld [vmem:[%s212_s9 + $0x10] sm:$0xff]  }
  0x1c   : > { %v1284_v3 = vld [vmem:[%s212_s9 + $0x20] sm:$0xff]   ;;  %1171 = vmatprep.mubr.msk.bf16.mxu0 %vm2493_vm0, %v1283_v2  ;;  %v1286_v5 = vld [vmem:[%s212_s9 + $0x28] sm:$0xff]   ;;  %v1288_v7 = vld [vmem:[%s212_s9 + $0x30] sm:$0xff]  }
  0x1d   : > { %1179 = vmatprep.mubr.msk.bf16.mxu1 %vm2493_vm0, %v1284_v3  ;;  %v1289_v8 = vld [vmem:[%s212_s9 + $0x18] sm:$0xff]   ;;  %v650_v10 = vld [vmem:[%s218_s14] sm:$0x7]  ;;  %v651_v11 = vld [vmem:[%s218_s14 + $0x4] sm:$0x7] }
  0x1e   : > { %1172 = vmatmul.mubr.msk.bf16.vlgmr.msra.gmra.mrb[0].mxu0 %vm2493_vm0, %v1285_v4  ;;  %1180 = vmatmul.mubr.msk.bf16.vlgmr.msra.gmra.mrb[0].mxu1 %vm2493_vm0, %v1286_v5  ;;  %v1290_v9 = vld [vmem:[%s212_s9 + $0x38] sm:$0xff]   ;;  %1191 = vpush %v650_v10  ;;  %v652_v12 = vld [vmem:[%s218_s14 + $0x8] sm:$0x7]  ;;  %v653_v13 = vld [vmem:[%s218_s14 + $0xc] sm:$0x7]  ;;  %v691_v16 = vrot.slane %v650_v10, 1 }
  0x1f   : > { %1175 = vmatprep.mubr.msk.bf16.mxu0 %vm2493_vm0, %v1287_v6  ;;  %1183 = vmatprep.mubr.msk.bf16.mxu1 %vm2493_vm0, %v1288_v7  ;;  %1193 = vpush %v651_v11  ;;  %v654_v14 = vld [vmem:[%s218_s14 + $0x10] sm:$0x7]  ;;  %v655_v15 = vld [vmem:[%s218_s14 + $0x14] sm:$0x7]  ;;  %v656_v17 = vld [vmem:[%s218_s14 + $0x18] sm:$0x7] }
  0x20   : > { %1195 = vpush %v652_v12  ;;  %v692_v18 = vrot.slane %v651_v11, 1  ;;  %v657_v19 = vld [vmem:[%s218_s14 + $0x1c] sm:$0x7]  ;;  %v693_v20 = vrot.slane %v652_v12, 1  ;;  %v694_v21 = vrot.slane %v653_v13, 1  ;;  %v695_v22 = vrot.slane %v654_v14, 1 }
  0x21   : > { %1197 = vpush %v653_v13  ;;  %v696_v23 = vrot.slane %v655_v15, 1  ;;  %v697_v24 = vrot.slane %v656_v17, 1  ;;  %v698_v25 = vrot.slane %v657_v19, 1  ;;  %v851_v26 = vrot.slane %v650_v10, 2 }
  0x22   : > { %1199 = vpush %v654_v14  ;;  %v852_v27 = vrot.slane %v651_v11, 2  ;;  %v853_v28 = vrot.slane %v652_v12, 2  ;;  %v854_v29 = vrot.slane %v653_v13, 2  ;;  %v855_v30 = vrot.slane %v654_v14, 2 }
  0x23   : > { %1201 = vpush %v655_v15  ;;  %v856_v31 = vrot.slane %v655_v15, 2  ;;  %v857_v32 = vrot.slane %v656_v17, 2  ;;  %v858_v33 = vrot.slane %v657_v19, 2  ;;  %v1533_v11 = vadd.s32 8, %v1454_v35 }
  0x24   : > { %1203 = vpush %v656_v17 }
  0x25   : > { %1205 = vpush %v657_v19 }
  0x26   : > { %1176 = vmatmul.mubr.msk.bf16.gmra.mrb[4].mxu0 %vm2493_vm0, %v1289_v8  ;;  %1184 = vmatmul.mubr.msk.bf16.gmra.mrb[4].mxu1 %vm2493_vm0, %v1290_v9  ;;  %1207 = vpush %v691_v16 }
  0x27   : > { %1209 = vpush %v692_v18 }
  0x28   : > { %1211 = vpush %v693_v20 }
  0x29   : > { %1213 = vpush %v694_v21 }
  0x2a   : > { %1215 = vpush %v695_v22 }
  0x2b   : > { %1217 = vpush %v696_v23 }
  0x2c   : > { %1219 = vpush %v697_v24 }
  0x2d   : > { %1221 = vpush %v698_v25 }
  0x2e   : > { %1223 = vpush %v851_v26 }
  0x2f   : > { %1225 = vpush %v852_v27 }
  0x30   : > { %1227 = vpush %v853_v28 }
  0x31   : > { %1229 = vpush %v854_v29 }
  0x32   : > { %1231 = vpush %v855_v30 }
  0x33   : > { %1233 = vpush %v856_v31 }
  0x34   : > { %1235 = vpush %v857_v32 }
  0x35   : > { %1237 = vpush %v858_v33 }
  0x4f   : > { %s1535_s23 = spop %1191 }
  0x50   : > { %s1551_s27 = spop %1193  ;;  %v660_v22 = vstv %s1535_s23 }
  0x51   : > { %v662_v18 = vstv %s1551_s27  ;;  %s1566_s28 = spop %1195  ;;  %vm1592_vm3 = vcmp.ge.s32.totalorder %v1533_v11, %v660_v22  ;;  %vm675_vm7 = vcmp.ge.s32.totalorder %v1454_v35, %v660_v22 }
  0x52   : > { %vm1582_vm2 = vcmp.ge.s32.totalorder %v1533_v11, %v662_v18  ;;  %v664_v24 = vstv %s1566_s28  ;;  %s1587_s29 = spop %1197  ;;  %vm1646_vm10 = vcmp.ge.s32.totalorder %v1454_v35, %v662_v18 }
  0x53   : > { %vm1597_vm4 = vcmp.ge.s32.totalorder %v1533_v11, %v664_v24  ;;  %s1601_s30 = spop %1199  ;;  %v666_v27 = vstv %s1587_s29  ;;  %vm1662_vm14 = vcmp.ge.s32.totalorder %v1454_v35, %v664_v24 }
  0x54   : > { %v668_v28 = vstv %s1601_s30  ;;  %s1607_s5 = spop %1201  ;;  %vm1610_vm5 = vcmp.ge.s32.totalorder %v1533_v11, %v666_v27 }
  0x55   : > { %vm1615_vm6 = vcmp.ge.s32.totalorder %v1533_v11, %v668_v28  ;;  %s1619_s6 = spop %1203  ;;  %v670_v31 = vstv %s1607_s5 }
  0x56   : > { %v672_v32 = vstv %s1619_s6  ;;  %s1623_s7 = spop %1205  ;;  %vm1629_vm8 = vcmp.ge.s32.totalorder %v1533_v11, %v670_v31 }
  0x57   : > { %vm1636_vm9 = vcmp.ge.s32.totalorder %v1533_v11, %v672_v32  ;;  %s1208_s8 = spop %1207 }
  0x58   : > { %s1210_s9 = spop %1209 }
  0x59   : > { %s1212_s10 = spop %1211 }
  0x5a   : > { %s1214_s11 = spop %1213 }
  0x5b   : > { %s1216_s12 = spop %1215 }
  0x5c   : > { %s1218_s13 = spop %1217 }
  0x5d   : > { %s1220_s14 = spop %1219 }
  0x5e   : > { %s1222_s23 = spop %1221 }
  0xf1   : > { %v1173_v36 = vpop.f32.mrb[0].mxu0  ;;  %v1181_v37 = vpop.f32.mrb[0].mxu1 }
  0xf2   : > { %470 = vrot.lane.b32.xlu1 %v1173_v36, %s1355_s20  ;;  %v1457_v38 = vpop.f32.mrb[1].mxu0  ;;  %583 = vrot.lane.b32.xlu0 %v1181_v37, %s1356_s22  ;;  %v384_v39 = vpop.f32.mrb[1].mxu1  ;;  %v417_v41 = vrot.slane %v1173_v36, 6  ;;  %v425_v45 = vrot.slane %v1181_v37, 6 }
  0xf3   : > { %v1460_v40 = vpop.f32.mrb[2].mxu0  ;;  %v1464_v43 = vpop.f32.mrb[2].mxu1  ;;  %v415_v46 = vrot.slane %v1457_v38, 6  ;;  %v423_v50 = vrot.slane %v384_v39, 6 }
  0xf4   : > { %v418_v42 = vrot.slane %v1460_v40, 6  ;;  %v1466_v44 = vpop.f32.mrb[3].mxu0  ;;  %v426_v47 = vrot.slane %v1464_v43, 6  ;;  %v1471_v49 = vpop.f32.mrb[3].mxu1 }
  0xf5   : > { %v416_v48 = vrot.slane %v1466_v44, 6  ;;  %v424_v51 = vrot.slane %v1471_v49, 6 }
  0xf6   : > { %486 = vrot.lane.b32.xlu1 %v1181_v37, %s1355_s20  ;;  %v1477_v52 = vsel %vm433_vm1, %v417_v41, %v418_v42  ;;  %466 = vrot.lane.b32.xlu0 %v1457_v38, %s1355_s20  ;;  %v1487_v54 = vsel %vm433_vm1, %v425_v45, %v426_v47  ;;  %v1643_v37 = vstv %s1208_s8 }
  0xf7   : > { %v1483_v53 = vsel %vm433_vm1, %v416_v48, %v417_v41  ;;  %v1491_v55 = vsel %vm433_vm1, %v415_v46, %v416_v48  ;;  %v1495_v56 = vsel %vm433_vm1, %v424_v51, %v425_v45  ;;  %v1499_v57 = vsel %vm433_vm1, %v423_v50, %v424_v51 }
  0xf8   : > { %vm715_vm12 = vcmp.lt.s32.totalorder %v1454_v35, %v1643_v37  ;;  %vm716_vm13 = vcmp.lt.s32.totalorder %v1533_v11, %v1643_v37  ;;  %v2527_v41 = vmov 0  ;;  %v1672_v45 = vstv %s1212_s10  ;;  %s205_s10 = sand.u32 1, %s1345_s16  }
  0xf9   : > { %v1501_v58 = vpop.f32.mrb[4].mxu0  ;;  %v1504_v60 = vpop.f32.mrb[4].mxu1  ;;  %vm1666_vm15 = vmand %vm675_vm7, %vm715_vm12  ;;  %vm1698_vm7 = vcmp.ge.s32.totalorder %v1454_v35, %v668_v28  ;;  %v2535_v48 = vmov 0  ;;  %v1710_v51 = vstv %s1216_s12  ;;  %s1154_s12 = sshll.u32 %s1405_s19, 7 }
  0xfa   : > { %v421_v59 = vrot.slane %v1501_v58, 6  ;;  %567 = vrot.lane.b32.xlu1 %v1173_v36, %s1356_s22  ;;  %v1507_v61 = vpop.f32.mrb[5].mxu0  ;;  %v1509_v62 = vpop.f32.mrb[5].mxu1  ;;  %579 = vrot.lane.b32.xlu0 %v384_v39, %s1356_s22  ;;  %v429_v1 = vrot.slane %v1504_v60, 6  ;;  %v674_v36 = vstv %s1623_s7  ;;  %v2528_v41 = vsel %vm1666_vm15, 4294967295, %v2527_v41  ;;  %vm1686_vm15 = vmand %vm1592_vm3, %vm716_vm13 }
  0xfb   : > { %v419_v63 = vrot.slane %v1507_v61, 6  ;;  %v1513_v0 = vpop.f32.mrb[6].mxu0  ;;  %v427_v2 = vrot.slane %v1509_v62, 6  ;;  %v1518_v4 = vpop.f32.mrb[6].mxu1  ;;  %vm1653_vm11 = vcmp.ge.s32.totalorder %v1533_v11, %v674_v36 }
  0xfc   : > { %v422_v3 = vrot.slane %v1513_v0, 6  ;;  %v1520_v5 = vpop.f32.mrb[7].mxu0  ;;  %v430_v6 = vrot.slane %v1518_v4, 6  ;;  %v1524_v8 = vpop.f32.mrb[7].mxu1 }
  0xfd   : > { %v420_v7 = vrot.slane %v1520_v5, 6  ;;  %v1528_v9 = vsel %vm433_vm1, %v418_v42, %v419_v63  ;;  %v428_v10 = vrot.slane %v1524_v8, 6  ;;  %v1563_v17 = vsel %vm433_vm1, %v426_v47, %v427_v2 }
  0xfe   : > { %482 = vrot.lane.b32.xlu1 %v384_v39, %s1355_s20  ;;  %v1539_v12 = vsel %vm433_vm1, %v422_v3, %v423_v50  ;;  %v1543_v13 = vsel %vm433_vm1, %v421_v59, %v422_v3  ;;  %488 = vrot.lane.b32.xlu0 %v1464_v43, %s1355_s20  ;;  %v1555_v15 = vsel %vm433_vm1, %v430_v6, %v415_v46  ;;  %v2523_v39 = vmov 0 }
  0xff   : > { %v1549_v14 = vsel %vm433_vm1, %v420_v7, %v421_v59  ;;  %v1559_v16 = vsel %vm433_vm1, %v419_v63, %v420_v7  ;;  %v1570_v19 = vsel %vm433_vm1, %v427_v2, %v428_v10  ;;  %v1574_v20 = vsel %vm433_vm1, %v429_v1, %v430_v6 }
 0x100   : > { %v1578_v21 = vsel %vm433_vm1, %v428_v10, %v429_v1  ;;  %v2524_v39 = vsel %vm1653_vm11, 4294967295, %v2523_v39  ;;  %v1670_v42 = vstv %s1210_s9  ;;  %v2529_v46 = vmov 0  ;;  %s1357_s9 = smov 32  }
 0x101   : > { %2506 = vst [vmem:[#allocation5_spill] sm:$0xff] %v1578_v21  ;;  %vm717_vm1 = vcmp.lt.s32.totalorder %v1454_v35, %v1670_v42  ;;  %vm718_vm0 = vcmp.lt.s32.totalorder %v1533_v11, %v1670_v42  ;;  %v2530_v46 = vsel %vm1686_vm15, 4294967295, %v2529_v46  ;;  %vm1693_vm11 = vcmp.ge.s32.totalorder %v1454_v35, %v666_v27 }
 0x102   : > { %563 = vrot.lane.b32.xlu1 %v1457_v38, %s1356_s22  ;;  %569 = vrot.lane.b32.xlu0 %v1460_v40, %s1356_s22  ;;  %vm1704_vm12 = vmand %vm1646_vm10, %vm717_vm1  ;;  %v1708_v50 = vstv %s1214_s11  ;;  %vm723_vm1 = vcmp.lt.s32.totalorder %v1454_v35, %v1710_v51  ;;  %v2540_v63 = vmov 0  ;;  %v1736_v1 = vstv %s1218_s13  ;;  %s1129_s11 = sshll.u32 %s205_s10, 3 }
 0x103   : > { %v2536_v48 = vsel %vm1704_vm12, 4294967295, %v2535_v48  ;;  %vm1714_vm3 = vmand %vm1582_vm2, %vm718_vm0  ;;  %vm721_vm13 = vcmp.lt.s32.totalorder %v1454_v35, %v1708_v50  ;;  %vm685_vm12 = vcmp.ge.s32.totalorder %v1454_v35, %v670_v31  ;;  %vm2539_vm0 = vcmp.lt.s32.totalorder %v1454_v35, %v1672_v45  ;;  %s207_s13 = scalar_lea.vmem [#allocation2], %s1129_s11 }
 0x104   : > { %vm1732_vm2 = vmand %vm1662_vm14, %vm2539_vm0  ;;  %v1738_v2 = vstv %s1220_s14  ;;  %v2542_v3 = vmov 0  ;;  %vm725_vm15 = vcmp.lt.s32.totalorder %v1454_v35, %v1736_v1  ;;  %vm726_vm14 = vcmp.lt.s32.totalorder %v1533_v11, %v1736_v1  ;;  %s1054_s14 = sshll.u32 %s207_s13, 4  ;;  %s2448_s14 = int_to_ptr.vmem [resolvable:$true] %s1054_s14 }
 0x105   : > { %v2541_v63 = vsel %vm1732_vm2, 4294967295, %v2540_v63  ;;  %vm1744_vm10 = vmand %vm1693_vm11, %vm721_vm13  ;;  %v1762_v6 = vstv %s1222_s23  ;;  %s1291_s19 = scalar_lea.vmem %s2448_s14, 128 }
 0x106   : > { %472 = vrot.lane.b32.xlu1 %v1460_v40, %s1355_s20  ;;  %468 = vrot.lane.b32.xlu0 %v1466_v44, %s1355_s20  ;;  %v2543_v3 = vsel %vm1744_vm10, 4294967295, %v2542_v3  ;;  %vm1758_vm2 = vmand %vm1698_vm7, %vm723_vm1  ;;  %vm2553_vm7 = vcmp.lt.s32.totalorder %v1533_v11, %v1708_v50  ;;  %vm2567_vm10 = vnez %v2524_v39  ;;  %p1292_p12 = scmp.ne.s32.totalorder %s2448_s14, %s1291_s19 }
 0x107   : > { %vm1764_vm11 = vmand %vm685_vm12, %vm725_vm15 }
 0x108   : > { %vm1772_vm0 = vmand %vm1629_vm8, %vm726_vm14  ;;  %vm2550_vm8 = vcmp.lt.s32.totalorder %v1533_v11, %v1710_v51  ;;  %vm689_vm14 = vcmp.ge.s32.totalorder %v1454_v35, %v674_v36  ;;  %p1293_p13 = pnand %p1292_p12, %p1422_p5 }
 0x109   : > { %vm1795_vm15 = vmand %vm1615_vm6, %vm2550_vm8  ;;  %vm2556_vm6 = vcmp.lt.s32.totalorder %v1533_v11, %v1672_v45  ;;  %vm729_vm8 = vcmp.lt.s32.totalorder %v1454_v35, %v1762_v6 }
 0x10a   : > { %585 = vrot.lane.b32.xlu1 %v1464_v43, %s1356_s22  ;;  %484 = vrot.lane.b32.xlu0 %v1471_v49, %s1355_s20  ;;  %vm1806_vm12 = vmand %vm1610_vm5, %vm2553_vm7  ;;  %vm687_vm5 = vcmp.ge.s32.totalorder %v1454_v35, %v672_v32  ;;  %vm2559_vm7 = vcmp.lt.s32.totalorder %v1533_v11, %v1738_v2  ;;  %p1294_p0 = pneg %p1293_p13 }
 0x10b   : > { %vm1819_vm1 = vmand %vm1597_vm4, %vm2556_vm6  ;;  %vm727_vm4 = vcmp.lt.s32.totalorder %v1454_v35, %v1738_v2 }
 0x10c   : > { %vm1846_vm6 = vmand %vm1636_vm9, %vm2559_vm7 }
 0x10d   : > { %vm1852_vm13 = vmand %vm687_vm5, %vm727_vm4  ;;  %vm838_vm5 = vcmp.ge.s32.totalorder %v1533_v11, %v1670_v42 }
 0x10e   : > { %581 = vrot.lane.b32.xlu1 %v1471_v49, %s1356_s22  ;;  %565 = vrot.lane.b32.xlu0 %v1466_v44, %s1356_s22  ;;  %vm1867_vm9 = vmand %vm689_vm14, %vm729_vm8  ;;  %vm846_vm14 = vcmp.ge.s32.totalorder %v1533_v11, %v1736_v1 }
 0x112   : > { %478 = vrot.lane.b32.xlu1 %v1501_v58, %s1355_s20  ;;  %575 = vrot.lane.b32.xlu0 %v1501_v58, %s1356_s22  ;;  %v2554_v58 = vmov 0 }
 0x113   : > { %v2555_v58 = vsel %vm1806_vm12, 4294967295, %v2554_v58 }
 0x116   : > { %494 = vrot.lane.b32.xlu1 %v1504_v60, %s1355_s20  ;;  %571 = vrot.lane.b32.xlu0 %v1507_v61, %s1356_s22 }
 0x11a   : > { %474 = vrot.lane.b32.xlu1 %v1507_v61, %s1355_s20  ;;  %496 = vrot.lane.b32.xlu0 %v1518_v4, %s1355_s20  ;;  %v2557_v61 = vmov 0 }
 0x11b   : > { %v2558_v61 = vsel %vm1819_vm1, 4294967295, %v2557_v61  ;;  %vm2566_vm1 = vcmp.lt.s32.totalorder %v1533_v11, %v1762_v6 }
 0x11c   : > { %vm1863_vm12 = vmand %vm2567_vm10, %vm2566_vm1  ;;  %vm2499_vm10 = vcmp.lt.s32.totalorder %v1454_v35, 1 }
 0x11e   : > { %490 = vrot.lane.b32.xlu1 %v1509_v62, %s1355_s20  ;;  %480 = vrot.lane.b32.xlu0 %v1513_v0, %s1355_s20 }
 0x122   : > { %577 = vrot.lane.b32.xlu1 %v1513_v0, %s1356_s22  ;;  %476 = vrot.lane.b32.xlu0 %v1520_v5, %s1355_s20  ;;  %v2560_v0 = vmov 0 }
 0x123   : > { %v2561_v0 = vsel %vm1846_vm6, 4294967295, %v2560_v0 }
 0x124   : > { %2562 = vst [vmem:[#allocation6_spill] sm:$0xff] %v2561_v0 }
 0x126   : > { %573 = vrot.lane.b32.xlu1 %v1520_v5, %s1356_s22  ;;  %492 = vrot.lane.b32.xlu0 %v1524_v8, %s1355_s20  ;;  %v2568_v5 = vmov 0  ;;  %s1875_s20 = spop %1223 }
 0x127   : > { %v2569_v5 = vsel %vm1863_vm12, 4294967295, %v2568_v5 }
 0x128   : > { %2570 = vst [vmem:[#allocation8_spill] sm:$0xff] %v2569_v5 }
 0x12a   : > { %589 = vrot.lane.b32.xlu1 %v1524_v8, %s1356_s22  ;;  %587 = vrot.lane.b32.xlu0 %v1509_v62, %s1356_s22  ;;  %v2563_v62 = vmov 0  ;;  %v2571_v8 = vmov 0 }
 0x12b   : > { %v2564_v62 = vsel %vm1852_vm13, 4294967295, %v2563_v62  ;;  %v2572_v8 = vsel %vm1867_vm9, 4294967295, %v2571_v8 }
 0x12c   : > { %2565 = vst [vmem:[#allocation7_spill] sm:$0xff] %v2564_v62  ;;  %2573 = vst [vmem:[#allocation9_spill] sm:$0xff] %v2572_v8 }
 0x12e   : > { %593 = vrot.lane.b32.xlu1 %v1518_v4, %s1356_s22  ;;  %591 = vrot.lane.b32.xlu0 %v1504_v60, %s1356_s22  ;;  %s1879_s22 = spop %1225 }
 0x12f   : > { %s1883_s27 = spop %1227  ;;  %v862_v33 = vstv %s1879_s22  ;;  %s2446_s22 = scalar_lea.hbm %s2492_s4, %s1154_s12 }
 0x130   : > { %s1887_s28 = spop %1229  ;;  %vm1916_vm4 = vcmp.lt.s32.totalorder %v1533_v11, %v862_v33  ;;  %vm877_vm7 = vcmp.lt.s32.totalorder %v1454_v35, %v862_v33 }
 0x131   : > { %s1892_s29 = spop %1231  ;;  %vm1940_vm1 = vmand %vm838_vm5, %vm1916_vm4  ;;  %vm2580_vm5 = vcmp.lt.s32.totalorder %v1454_v35, 1 }
 0x132   : > { %s1895_s30 = spop %1233  ;;  %vm2581_vm4 = vmmov %vm2580_vm5 }
 0x133   : > { %v870_v39 = vstv %s1895_s30  ;;  %s2032_s7 = spop %1235 }
 0x134   : > { %vm886_vm8 = vcmp.lt.s32.totalorder %v1533_v11, %v870_v39  ;;  %s2051_s8 = spop %1237 }
 0x135   : > { %vm1951_vm9 = vmand %vm846_vm14, %vm886_vm8  ;;  %vm1971_vm14 = vcmp.lt.s32.totalorder %v1454_v35, %v870_v39  ;;  %vm836_vm8 = vcmp.ge.s32.totalorder %v1533_v11, %v1643_v37 }
 0x164   : > { %v471_v4 = vpop.permute.xlu1 %470  ;;  %v1871_v18 = vpop.permute.xlu0 %583 }
 0x165   : > { %v516_v34 = vrot.slane %v471_v4, 7 }
 0x168   : > { %v487_v22 = vpop.permute.xlu1 %486  ;;  %v1873_v23 = vpop.permute.xlu0 %466 }
 0x169   : > { %v524_v30 = vrot.slane %v487_v22, 7 }
 0x16c   : > { %v568_v60 = vpop.permute.xlu1 %567  ;;  %v1877_v24 = vpop.permute.xlu0 %579 }
 0x170   : > { %v1881_v25 = vpop.permute.xlu1 %482  ;;  %v1885_v26 = vpop.permute.xlu0 %488 }
 0x171   : > { %v2494_v27 = vrot.slane %v1885_v26, 7 }
 0x173   : > { %v535_v32 = vsel %vm2499_vm10, %v524_v30, %v2494_v27  ;;  %v1926_v27 = vld [vmem:[%s2491_s3] ss:$0 sm:$0xff] }
 0x174   : > { %v1890_v28 = vpop.permute.xlu1 %563  ;;  %v570_v29 = vpop.permute.xlu0 %569  ;;  %v558_v47 = vadd.f32 %v535_v32, %v1487_v54  ;;  %v2500_v54 = vrot.slane %v1873_v23, 7 }
 0x178   : > { %v1897_v31 = vpop.permute.xlu1 %472  ;;  %v469_v38 = vpop.permute.xlu0 %468 }
 0x179   : > { %v2495_v36 = vrot.slane %v1897_v31, 7  ;;  %v515_v40 = vrot.slane %v469_v38, 7 }
 0x17b   : > { %v543_v43 = vsel %vm2499_vm10, %v516_v34, %v2495_v36  ;;  %v544_v38 = vsel %vm2499_vm10, %v515_v40, %v516_v34  ;;  %vm2582_vm10 = vcmp.ge.s32.totalorder %v1454_v35, %v1670_v42 }
 0x17c   : > { %v550_v22 = vadd.f32 %v543_v43, %v1477_v52  ;;  %v586_v36 = vpop.permute.xlu1 %585  ;;  %v549_v32 = vadd.f32 %v544_v38, %v1483_v53  ;;  %v485_v52 = vpop.permute.xlu0 %484  ;;  %v860_v43 = vstv %s1875_s20  ;;  %v2501_v53 = vrot.slane %v1881_v25, 7  ;;  %vm1965_vm6 = vmand %vm2582_vm10, %vm877_vm7 }
 0x17d   : > { %v622_v8 = vadd.f32 %v586_v36, %v558_v47  ;;  %v523_v34 = vrot.slane %v485_v52, 7  ;;  %v545_v47 = vsel %vm2580_vm5, %v2500_v54, %v515_v40  ;;  %vm2587_vm10 = vmmov %vm2581_vm4  ;;  %vm2589_vm7 = vcmask 261120  }
 0x17e   : > { %v614_v0 = vadd.f32 %v570_v29, %v550_v22  ;;  %v613_v33 = vadd.f32 %v568_v60, %v549_v32  ;;  %v868_v60 = vstv %s1892_s29  ;;  %vm2590_vm5 = vmmov %vm2589_vm7 }
 0x17f   : > { %v645_v36 = vadd.f32 %v1926_v27, %v622_v8  ;;  %v536_v4 = vsel %vm2581_vm4, %v523_v34, %v524_v30 }
 0x180   : > { %v637_v22 = vadd.f32 %v1926_v27, %v614_v0  ;;  %v582_v32 = vpop.permute.xlu1 %581  ;;  %v557_v40 = vadd.f32 %v536_v4, %v1495_v56  ;;  %v636_v42 = vadd.f32 %v1926_v27, %v613_v33  ;;  %v537_v0 = vsel %vm2587_vm10, %v2501_v53, %v523_v34  ;;  %v566_v39 = vpop.permute.xlu0 %565 }
 0x181   : > { %v758_v30 = vsel %vm1772_vm0, %v645_v36, -1e+08  ;;  %v918_v10 = vsel %vm1951_vm9, %v645_v36, -1e+08  ;;  %v548_v4 = vadd.f32 %v545_v47, %v1491_v55  ;;  %vm2588_vm0 = vnez %v2536_v48 }
 0x182   : > { %v750_v52 = vsel %vm1714_vm3, %v637_v22, -1e+08  ;;  %v910_v56 = vsel %vm1940_vm1, %v637_v22, -1e+08  ;;  %v749_v33 = vsel %vm2588_vm0, %v636_v42, -1e+08  ;;  %vm2591_vm3 = vmmov %vm2590_vm5  ;;  %v621_v29 = vadd.f32 %v1871_v18, %v557_v40 }
 0x183   : > { %v773_v54 = vsel %vm2589_vm7, %v750_v52, -inf  ;;  %v909_v34 = vsel %vm1965_vm6, %v636_v42, -1e+08  ;;  %v933_v59 = vsel %vm2590_vm5, %v910_v56, -inf  ;;  %v772_v53 = vsel %vm2591_vm3, %v749_v33, -inf  ;;  %vm2592_vm4 = vmmov %vm2591_vm3 }
 0x184   : > { %v932_v5 = vsel %vm2592_vm4, %v909_v34, -inf  ;;  %v556_v36 = vadd.f32 %v537_v0, %v1499_v57  ;;  %v2002_v55 = vpop.permute.xlu1 %478  ;;  %v774_v48 = vmax.f32 %v772_v53, %v773_v54  ;;  %vm844_vm9 = vcmp.ge.s32.totalorder %v1533_v11, %v1710_v51  ;;  %v2015_v18 = vpop.permute.xlu0 %575  ;;  %vm2601_vm7 = vmmov %vm2591_vm3 }
 0x185   : > { %v934_v47 = vmax.f32 %v932_v5, %v933_v59  ;;  %vm2593_vm6 = vcmp.ge.s32.totalorder %v1454_v35, %v1736_v1  ;;  %v612_v8 = vadd.f32 %v566_v39, %v548_v4  ;;  %vm2018_vm10 = vcmp.lt.s32.totalorder %v1533_v11, %v860_v43 }
 0x186   : > { %vm2011_vm1 = vmand %vm2593_vm6, %vm1971_vm14  ;;  %vm2025_vm0 = vcmp.lt.s32.totalorder %v1533_v11, %v868_v60  ;;  %v644_v1 = vadd.f32 %v1926_v27, %v621_v29  ;;  %v620_v53 = vadd.f32 %v582_v32, %v556_v36  ;;  %v775_v40 = vrot.slane %v774_v48, 4 }
 0x187   : > { %vm2600_vm14 = vmmov %vm2591_vm3  ;;  %v935_v42 = vrot.slane %v934_v47, 4  ;;  %v969_v0 = vsel %vm2601_vm7, %v918_v10, -inf  ;;  %v635_v4 = vadd.f32 %v1926_v27, %v612_v8  ;;  %vm835_vm5 = vcmp.ge.s32.totalorder %v1454_v35, %v1643_v37 }
 0x188   : > { %v809_v38 = vsel %vm2600_vm14, %v758_v30, -inf  ;;  %v757_v39 = vsel %vm1764_vm11, %v644_v1, -1e+08  ;;  %v917_v52 = vsel %vm2011_vm1, %v644_v1, -1e+08  ;;  %v643_v56 = vadd.f32 %v1926_v27, %v620_v53  ;;  %v2040_v32 = vpop.permute.xlu1 %494  ;;  %vm2604_vm11 = vmmov %vm2592_vm4  ;;  %v572_v59 = vpop.permute.xlu0 %571 }
 0x189   : > { %vm2045_vm3 = vcmp.lt.s32.totalorder %v1454_v35, %v860_v43  ;;  %v776_v7 = vmax.f32 %v774_v48, %v775_v40  ;;  %v936_v10 = vmax.f32 %v934_v47, %v935_v42  ;;  %v808_v33 = vsel %vm2604_vm11, %v757_v39, -inf  ;;  %vm2059_vm6 = vmand %vm844_vm9, %vm2025_vm0 }
 0x18a   : > { %v968_v34 = vsel %vm2592_vm4, %v917_v52, -inf  ;;  %v2502_v5 = vstv %s1883_s27  ;;  %v810_v29 = vmax.f32 %v808_v33, %v809_v38  ;;  %v756_v48 = vsel %vm1795_vm15, %v643_v56, -1e+08  ;;  %vm2072_vm9 = vmand %vm836_vm8, %vm2018_vm10 }
 0x18b   : > { %v970_v36 = vmax.f32 %v968_v34, %v969_v0  ;;  %v777_v47 = vrot.slane %v776_v7, 2  ;;  %v937_v22 = vrot.slane %v936_v10, 2  ;;  %v866_v8 = vstv %s1887_s28  ;;  %vm2614_vm14 = vmmov %vm2592_vm4  ;;  %s1358_s28 = smov [#allocation2]  }
 0x18c   : > { %v811_v53 = vrot.slane %v810_v29, 4  ;;  %vm2609_vm1 = vnez %v2530_v46  ;;  %v2078_v40 = vpop.permute.xlu1 %474  ;;  %vm839_vm15 = vcmp.ge.s32.totalorder %v1454_v35, %v1672_v45  ;;  %vm2086_vm0 = vcmp.lt.s32.totalorder %v1454_v35, %v2502_v5  ;;  %v497_v33 = vpop.permute.xlu0 %496  ;;  %s1295_s29 = sshll.u32 %s1358_s28, 4  ;;  %s1296_s29 = int_to_ptr.vmem [resolvable:$false] %s1295_s29 }
 0x18d   : > { %v971_v38 = vrot.slane %v970_v36, 4  ;;  %v748_v44 = vsel %vm2609_vm1, %v635_v4, -1e+08  ;;  %v778_v0 = vmax.f32 %v776_v7, %v777_v47  ;;  %v938_v39 = vmax.f32 %v936_v10, %v937_v22  ;;  %s1297_s30 = scalar_lea.vmem %s1296_s29, 256  ;;  %p1298_p1 = scmp.lt.s32.totalorder %s2448_s14, %s1296_s29 }
 0x18e   : > { %v916_v52 = vsel %vm2059_vm6, %v643_v56, -1e+08  ;;  %vm843_vm8 = vcmp.ge.s32.totalorder %v1454_v35, %v1710_v51  ;;  %vm2098_vm10 = vcmp.lt.s32.totalorder %v1454_v35, %v868_v60  ;;  %v812_v10 = vmax.f32 %v810_v29, %v811_v53  ;;  %vm2619_vm6 = vmmov %vm2614_vm14  ;;  %p1299_p2 = scmp.lt.s32.totalorder %s1297_s30, %s1291_s19 }
 0x18f   : > { %v972_v34 = vmax.f32 %v970_v36, %v971_v38  ;;  %v2103_v47 = vsel %vm2614_vm14, %v756_v48, -inf  ;;  %v529_v22 = vrot.slane %v497_v33, 7  ;;  %v779_v43 = vrot.slane %v778_v0, 1  ;;  %vm2623_vm14 = vmmov %vm2619_vm6 }
 0x190   : > { %v908_v56 = vsel %vm2072_vm9, %v635_v4, -1e+08  ;;  %v518_v1 = vrot.slane %v2078_v40, 7  ;;  %v939_v5 = vrot.slane %v938_v39, 1  ;;  %vm842_vm7 = vcmp.ge.s32.totalorder %v1533_v11, %v1708_v50  ;;  %v2120_v54 = vpop.permute.xlu1 %490  ;;  %vm2620_vm9 = vmmov %vm2619_vm6  ;;  %p1300_p3 = por %p1299_p2, %p1298_p1 }
 0x191   : > { %vm2112_vm11 = vcmp.lt.s32.totalorder %v1533_v11, %v866_v8  ;;  %v813_v29 = vrot.slane %v812_v10, 2  ;;  %v973_v36 = vrot.slane %v972_v34, 2  ;;  %v2617_v48 = vrot.slane %v1873_v23, 7  ;;  %v481_v23 = vpop.permute.xlu0 %480 }
 0x192   : > { %vm2618_vm4 = vcmp.lt.s32.totalorder %v1454_v35, 1  ;;  %v2123_v53 = vsel %vm2619_vm6, %v916_v52, -inf  ;;  %v764_v38 = vsel %vm2620_vm9, %v748_v44, -inf  ;;  %v2621_v46 = vrot.slane %v1897_v31, 7  ;;  %p1301_p4 = pnand %p1300_p3, %p1294_p0 }
 0x193   : > { %v546_v4 = vsel %vm2618_vm4, %v529_v22, %v2617_v48  ;;  %vm2622_vm1 = vmmov %vm2618_vm4  ;;  %v924_v21 = vsel %vm2623_vm14, %v908_v56, -inf  ;;  %v526_v62 = vrot.slane %v2120_v54, 7  ;;  %v2624_v52 = vrot.slane %v2040_v32, 7 }
 0x194   : > { %v547_v33 = vadd.f32 %v546_v4, %v1555_v15  ;;  %v542_v42 = vsel %vm2622_vm1, %v2621_v46, %v518_v1  ;;  %vm2625_vm4 = vmmov %vm2622_vm1  ;;  %v2140_v15 = vmax.f32 %v778_v0, %v779_v43  ;;  %vm841_vm6 = vcmp.ge.s32.totalorder %v1454_v35, %v1708_v50  ;;  %v578_v56 = vpop.permute.xlu1 %577 }
 0x195   : > { %v551_v48 = vadd.f32 %v542_v42, %v1528_v9  ;;  %v531_v44 = vsel %vm2625_vm4, %v2624_v52, %v529_v22  ;;  %vm2145_vm9 = vcmp.lt.s32.totalorder %v1454_v35, %v866_v8  ;;  %v2149_v46 = vmax.f32 %v972_v34, %v973_v36  ;;  %vm2157_vm1 = vmand %vm835_vm5, %vm2045_vm3 }
 0x196   : > { %v611_v9 = vadd.f32 %v1890_v28, %v547_v33  ;;  %v521_v42 = vrot.slane %v481_v23, 7  ;;  %v2161_v22 = vmax.f32 %v938_v39, %v939_v5  ;;  %v2163_v8 = vmax.f32 %v812_v10, %v813_v29  ;;  %vm2631_vm14 = vmmov %vm2625_vm4  ;;  %v477_v39 = vpop.permute.xlu0 %476 }
 0x197   : > { %v615_v43 = vadd.f32 %v572_v59, %v551_v48  ;;  %v2630_v28 = vrot.slane %v1885_v26, 7  ;;  %v2632_v37 = vrot.slane %v1881_v25, 7  ;;  %vm2633_vm5 = vmmov %vm2625_vm4  ;;  %v2634_v5 = vrot.slane %v2002_v55, 7 }
 0x198   : > { %v634_v34 = vadd.f32 %v1926_v27, %v611_v9  ;;  %vm2635_vm3 = vmmov %vm2625_vm4  ;;  %v2181_v10 = vadd.f32 %v531_v44, %v1574_v20  ;;  %v519_v33 = vrot.slane %v477_v39, 7  ;;  %v975_v25 = vrot.slane %v2149_v46, 1  ;;  %v574_v9 = vpop.permute.xlu1 %573 }
 0x199   : > { %v534_v30 = vsel %vm2631_vm14, %v2630_v28, %v526_v62  ;;  %v538_v36 = vsel %vm2633_vm5, %v521_v42, %v2632_v37  ;;  %v539_v59 = vsel %vm2635_vm3, %v2634_v5, %v521_v42  ;;  %v638_v26 = vadd.f32 %v1926_v27, %v615_v43  ;;  %vm2199_vm14 = vmand %vm839_vm15, %vm2086_vm0 }
 0x19a   : > { %v555_v29 = vadd.f32 %v538_v36, %v1539_v12  ;;  %v554_v4 = vadd.f32 %v539_v59, %v1543_v13  ;;  %vm2636_vm4 = vnez %v2528_v41  ;;  %v907_v48 = vsel %vm2157_vm1, %v634_v34, -1e+08  ;;  %vm2211_vm1 = vmand %vm843_vm8, %vm2098_vm10  ;;  %v493_v37 = vpop.permute.xlu0 %492 }
 0x19b   : > { %v747_v23 = vsel %vm2636_vm4, %v634_v34, -1e+08  ;;  %v2192_v52 = vadd.f32 %v534_v30, %v1563_v17  ;;  %vm2639_vm5 = vcmask 261120   ;;  %v2643_v0 = vmov %v2634_v5  ;;  %vm2241_vm10 = vmand %vm842_vm7, %vm2112_vm11 }
 0x19c   : > { %v763_v13 = vsel %vm2639_vm5, %v747_v23, -inf  ;;  %vm2640_vm3 = vmmov %vm2639_vm5  ;;  %v619_v41 = vadd.f32 %v1877_v24, %v555_v29  ;;  %v618_v44 = vadd.f32 %v578_v56, %v554_v4  ;;  %vm2644_vm15 = vcmp.lt.s32.totalorder %v1454_v35, 1  ;;  %v2258_v39 = vpop.permute.xlu1 %589 }
 0x19d   : > { %v923_v20 = vsel %vm2640_vm3, %v907_v48, -inf  ;;  %v765_v57 = vmax.f32 %v763_v13, %v764_v38  ;;  %v540_v43 = vsel %vm2644_vm15, %v519_v33, %v2643_v0  ;;  %vm2645_vm0 = vnez %v2541_v63  ;;  %vm2649_vm8 = vmmov %vm2640_vm3 }
 0x19e   : > { %v925_v42 = vmax.f32 %v923_v20, %v924_v21  ;;  %v751_v24 = vsel %vm2645_vm0, %v638_v26, -1e+08  ;;  %vm840_vm4 = vcmp.ge.s32.totalorder %v1533_v11, %v1672_v45  ;;  %v2646_v7 = vstv %s1883_s27  ;;  %vm2652_vm3 = vmmov %vm2644_vm15  ;;  %s1041_s27 = scalar_lea.sflag [#allocation3], %s205_s10 }
 0x19f   : > { %vm2226_vm5 = vcmp.lt.s32.totalorder %v1533_v11, %v2646_v7  ;;  %v642_v38 = vadd.f32 %v1926_v27, %v619_v41  ;;  %v641_v21 = vadd.f32 %v1926_v27, %v618_v44  ;;  %v553_v55 = vadd.f32 %v540_v43, %v1549_v14  ;;  %vm2654_vm11 = vmmov %vm2649_vm8 }
 0x1a0   : > { %v2234_v56 = vsel %vm2649_vm8, %v751_v24, -inf  ;;  %v766_v28 = vrot.slane %v765_v57, 4  ;;  %v926_v30 = vrot.slane %v925_v42, 4  ;;  %v911_v34 = vsel %vm2199_vm14, %v638_v26, -1e+08  ;;  %vm2655_vm14 = vmmov %vm2649_vm8  ;;  %v588_v24 = vpop.permute.xlu0 %587  ;;  %v594_v63 = vpop.permute.xlu1 %593 }
 0x1a1   : > { %v541_v14 = vsel %vm2652_vm3, %v518_v1, %v519_v33  ;;  %v755_v60 = vsel %vm1758_vm2, %v642_v38, -1e+08  ;;  %v915_v36 = vsel %vm2211_vm1, %v642_v38, -1e+08  ;;  %vm2653_vm7 = vnez %v2555_v58  ;;  %vm2267_vm2 = vmand %vm841_vm6, %vm2145_vm9 }
 0x1a2   : > { %v754_v5 = vsel %vm2653_vm7, %v641_v21, -1e+08  ;;  %v617_v59 = vadd.f32 %v2015_v18, %v553_v55  ;;  %v767_v26 = vmax.f32 %v765_v57, %v766_v28  ;;  %v927_v40 = vmax.f32 %v925_v42, %v926_v30  ;;  %vm2658_vm1 = vmmov %vm2649_vm8 }
 0x1a3   : > { %v799_v1 = vsel %vm2654_vm11, %v755_v60, -inf  ;;  %v959_v29 = vsel %vm2655_vm14, %v915_v36, -inf  ;;  %v791_v4 = vsel %vm2658_vm1, %v754_v5, -inf  ;;  %v914_v33 = vsel %vm2241_vm10, %v641_v21, -1e+08  ;;  %vm2662_vm6 = vmmov %vm2658_vm1 }
 0x1a4   : > { %v801_v58 = vmax.f32 %v799_v1, %v2103_v47  ;;  %v961_v18 = vmax.f32 %v959_v29, %v2123_v53  ;;  %vm847_vm15 = vcmp.ge.s32.totalorder %v1454_v35, %v1738_v2  ;;  %v2659_v31 = vstv %s2032_s7  ;;  %vm2666_vm10 = vmmov %vm2658_vm1 }
 0x1a5   : > { %vm2281_vm0 = vcmp.lt.s32.totalorder %v1454_v35, %v2659_v31  ;;  %v768_v23 = vrot.slane %v767_v26, 2  ;;  %v928_v48 = vrot.slane %v927_v40, 2  ;;  %v951_v47 = vsel %vm2662_vm6, %v914_v33, -inf  ;;  %vm2668_vm7 = vmmov %vm2658_vm1 }
 0x1a6   : > { %v640_v53 = vadd.f32 %v1926_v27, %v617_v59  ;;  %vm850_vm9 = vcmp.ge.s32.totalorder %v1533_v11, %v1762_v6  ;;  %v2663_v12 = vstv %s2051_s8  ;;  %v802_v20 = vrot.slane %v801_v58, 4  ;;  %vm2669_vm11 = vmmov %vm2658_vm1 }
 0x1a7   : > { %vm2292_vm8 = vcmp.lt.s32.totalorder %v1533_v11, %v2663_v12  ;;  %v962_v41 = vrot.slane %v961_v18, 4  ;;  %v941_v44 = vsel %vm2666_vm10, %v911_v34, -inf  ;;  %v552_v17 = vadd.f32 %v541_v14, %v1559_v16 }
 0x1a8   : > { %v769_v57 = vmax.f32 %v767_v26, %v768_v23  ;;  %v929_v42 = vmax.f32 %v927_v40, %v928_v48  ;;  %vm2667_vm3 = vnez %v2543_v3  ;;  %v913_v43 = vsel %vm2267_vm2, %v640_v53, -1e+08  ;;  %vm2324_vm2 = vmand %vm840_vm4, %vm2226_vm5  ;;  %v2694_v26 = vld [vmem:[#allocation6_spill] sm:$0xff] }
 0x1a9   : > { %v753_v0 = vsel %vm2667_vm3, %v640_v53, -1e+08  ;;  %v2302_v7 = vmax.f32 %v801_v58, %v802_v20  ;;  %v2304_v38 = vmax.f32 %v961_v18, %v962_v41  ;;  %v950_v55 = vsel %vm2669_vm11, %v913_v43, -inf  ;;  %vm2684_vm11 = vmmov %vm2668_vm7  ;;  %v592_v43 = vpop.permute.xlu0 %591 }
 0x1aa   : > { %v790_v21 = vsel %vm2668_vm7, %v753_v0, -inf  ;;  %vm848_vm14 = vcmp.ge.s32.totalorder %v1533_v11, %v1738_v2  ;;  %v2670_v16 = vmov %v2659_v31  ;;  %v770_v28 = vrot.slane %v769_v57, 1 }
 0x1ab   : > { %vm2313_vm1 = vcmp.lt.s32.totalorder %v1533_v11, %v2670_v16  ;;  %v930_v30 = vrot.slane %v929_v42, 1  ;;  %v792_v34 = vmax.f32 %v790_v21, %v791_v4  ;;  %v952_v14 = vmax.f32 %v950_v55, %v951_v47  ;;  %v2683_v47 = vld [vmem:[#allocation5_spill] sm:$0xff] }
 0x1ac   : > { %v804_v60 = vrot.slane %v2302_v7, 2  ;;  %v616_v36 = vadd.f32 %v574_v9, %v552_v17  ;;  %v527_v5 = vrot.slane %v493_v37, 7  ;;  %v623_v59 = vadd.f32 %v588_v24, %v2192_v52 }
 0x1ad   : > { %v2328_v40 = vmax.f32 %v769_v57, %v770_v28  ;;  %v793_v1 = vrot.slane %v792_v34, 4  ;;  %v953_v29 = vrot.slane %v952_v14, 4  ;;  %vm849_vm6 = vcmp.ge.s32.totalorder %v1454_v35, %v1762_v6 }
 0x1ae   : > { %v2675_v9 = vmov %v2663_v12  ;;  %v626_v51 = vadd.f32 %v594_v63, %v2181_v10  ;;  %v639_v45 = vadd.f32 %v1926_v27, %v616_v36  ;;  %vm2678_vm4 = vcmp.lt.s32.totalorder %v1454_v35, 1 }
 0x1af   : > { %vm2335_vm10 = vcmp.lt.s32.totalorder %v1454_v35, %v2675_v9  ;;  %v533_v37 = vsel %vm2678_vm4, %v526_v62, %v527_v5  ;;  %v646_v49 = vadd.f32 %v1926_v27, %v623_v59  ;;  %v2679_v58 = vrot.slane %v2040_v32, 7  ;;  %vm2680_vm5 = vmmov %vm2678_vm4 }
 0x1b0   : > { %v794_v4 = vmax.f32 %v792_v34, %v793_v1  ;;  %v954_v33 = vmax.f32 %v952_v14, %v953_v29  ;;  %v560_v31 = vadd.f32 %v533_v37, %v1570_v19  ;;  %v649_v10 = vadd.f32 %v1926_v27, %v626_v51  ;;  %vm2366_vm4 = vmand %vm847_vm15, %vm2281_vm0  ;;  %v2698_v37 = vld [vmem:[#allocation9_spill] sm:$0xff] }
 0x1b1   : > { %v532_v18 = vsel %vm2680_vm5, %v527_v5, %v2679_v58  ;;  %vm2681_vm3 = vnez %v2558_v61  ;;  %v912_v54 = vsel %vm2324_vm2, %v639_v45, -1e+08  ;;  %v759_v48 = vsel %vm1852_vm13, %v646_v49, -1e+08  ;;  %vm2376_vm13 = vmand %vm850_vm9, %vm2292_vm8 }
 0x1b2   : > { %v752_v23 = vsel %vm2681_vm3, %v639_v45, -1e+08  ;;  %v561_v32 = vadd.f32 %v532_v18, %v2683_v47  ;;  %v795_v53 = vrot.slane %v794_v4, 2  ;;  %v955_v12 = vrot.slane %v954_v33, 2  ;;  %vm2689_vm2 = vmmov %vm2668_vm7 }
 0x1b3   : > { %v782_v20 = vsel %vm2668_vm7, %v752_v23, -inf  ;;  %v942_v41 = vsel %vm2684_vm11, %v912_v54, -inf  ;;  %v624_v50 = vadd.f32 %v2258_v39, %v560_v31  ;;  %v817_v0 = vsel %vm2689_vm2, %v759_v48, -inf  ;;  %vm2691_vm0 = vmmov %vm2689_vm2 }
 0x1b4   : > { %v783_v61 = vmax.f32 %v2234_v56, %v782_v20  ;;  %v943_v17 = vmax.f32 %v941_v44, %v942_v41  ;;  %vm1003_vm15 = vcmask 1041409   ;;  %v2382_v24 = vmax.f32 %v794_v4, %v795_v53  ;;  %vm904_vm9 = vmand %vm848_vm14, %vm2313_vm1 }
 0x1b5   : > { %v919_v56 = vsel %vm2366_vm4, %v646_v49, -1e+08  ;;  %v762_v13 = vsel %vm1863_vm12, %v649_v10, -1e+08  ;;  %v922_v21 = vsel %vm2376_vm13, %v649_v10, -1e+08  ;;  %v647_v63 = vadd.f32 %v1926_v27, %v624_v50  ;;  %vm2692_vm8 = vmmov %vm2691_vm0 }
 0x1b6   : > { %v784_v55 = vrot.slane %v783_v61, 4  ;;  %v944_v16 = vrot.slane %v943_v17, 4  ;;  %v977_v39 = vsel %vm2691_vm0, %v919_v56, -inf  ;;  %v827_v28 = vsel %vm2692_vm8, %v762_v13, -inf  ;;  %vm2693_vm5 = vmmov %vm2691_vm0 }
 0x1b7   : > { %v987_v34 = vsel %vm2693_vm5, %v922_v21, -inf  ;;  %v625_v14 = vadd.f32 %v592_v43, %v561_v32  ;;  %v931_v36 = vmax.f32 %v929_v42, %v930_v30  ;;  %vm1005_vm12 = vcmask 1042434   ;;  %vm2696_vm11 = vmmov %vm2691_vm0 }
 0x1b8   : > { %v785_v5 = vmax.f32 %v783_v61, %v784_v55  ;;  %v945_v59 = vmax.f32 %v943_v17, %v944_v16  ;;  %vm2695_vm3 = vnez %v2694_v26  ;;  %v920_v29 = vsel %vm904_vm9, %v647_v63, -1e+08  ;;  %vm2697_vm4 = vmmov %vm2691_vm0 }
 0x1b9   : > { %v760_v1 = vsel %vm2695_vm3, %v647_v63, -1e+08  ;;  %vm1007_vm7 = vcmask 1043459   ;;  %v978_v9 = vsel %vm2697_vm4, %v920_v29, -inf  ;;  %v648_v11 = vadd.f32 %v1926_v27, %v625_v14  ;;  %vm905_vm1 = vmand %vm849_vm6, %vm2335_vm10 }
 0x1ba   : > { %v818_v3 = vsel %vm2696_vm11, %v760_v1, -inf  ;;  %v956_v2 = vmax.f32 %v954_v33, %v955_v12  ;;  %vm1009_vm14 = vcmask 1044484   ;;  %v786_v51 = vrot.slane %v785_v5, 2  ;;  %vm2700_vm9 = vmmov %vm2691_vm0 }
 0x1bb   : > { %v946_v45 = vrot.slane %v945_v59, 2  ;;  %v819_v42 = vmax.f32 %v817_v0, %v818_v3  ;;  %v979_v30 = vmax.f32 %v977_v39, %v978_v9  ;;  %vm1011_vm13 = vcmask 1045509   ;;  %vm2701_vm8 = vmmov %vm2691_vm0 }
 0x1bc   : > { %vm2699_vm2 = vnez %v2698_v37  ;;  %v921_v58 = vsel %vm905_vm1, %v648_v11, -1e+08  ;;  %v957_v18 = vrot.slane %v956_v2, 1  ;;  %v964_v27 = vrot.slane %v2304_v38, 2 }
 0x1bd   : > { %v761_v49 = vsel %vm2699_vm2, %v648_v11, -1e+08  ;;  %v787_v4 = vmax.f32 %v785_v5, %v786_v51  ;;  %v947_v33 = vmax.f32 %v945_v59, %v946_v45  ;;  %v820_v31 = vrot.slane %v819_v42, 4 }
 0x1be   : > { %v980_v10 = vrot.slane %v979_v30, 4  ;;  %v826_v52 = vsel %vm2691_vm0, %v761_v49, -inf  ;;  %v986_v23 = vsel %vm2700_vm9, %v921_v58, -inf  ;;  %v958_v35 = vmax.f32 %v956_v2, %v957_v18 }
 0x1bf   : > { %v965_v6 = vmax.f32 %v2304_v38, %v964_v27  ;;  %vm1013_vm6 = vcmask 1046534   ;;  %v788_v54 = vrot.slane %v787_v4, 1  ;;  %v948_v62 = vrot.slane %v947_v33, 1 }
 0x1c0   : > { %v821_v48 = vmax.f32 %v819_v42, %v820_v31  ;;  %v981_v47 = vmax.f32 %v979_v30, %v980_v10  ;;  %v828_v32 = vmax.f32 %v826_v52, %v827_v28  ;;  %v988_v53 = vmax.f32 %v986_v23, %v987_v34 }
 0x1c1   : > { %v966_v12 = vrot.slane %v965_v6, 1  ;;  %v1026_v20 = vsel %vm1003_vm15, %v2161_v22, %v931_v36  ;;  %v789_v41 = vmax.f32 %v787_v4, %v788_v54  ;;  %v949_v19 = vmax.f32 %v947_v33, %v948_v62 }
 0x1c2   : > { %v822_v61 = vrot.slane %v821_v48, 2  ;;  %v982_v17 = vrot.slane %v981_v47, 2  ;;  %v829_v57 = vrot.slane %v828_v32, 4  ;;  %v989_v50 = vrot.slane %v988_v53, 4 }
 0x1c3   : > { %v967_v0 = vmax.f32 %v965_v6, %v966_v12  ;;  %v805_v38 = vmax.f32 %v2302_v7, %v804_v60  ;;  %v1027_v44 = vsel %vm1005_vm12, %v949_v19, %v1026_v20  ;;  %v1004_v13 = vsel %vm1003_vm15, %v2140_v15, %v2328_v40 }
 0x1c4   : > { %v823_v43 = vmax.f32 %v821_v48, %v822_v61  ;;  %v983_v56 = vmax.f32 %v981_v47, %v982_v17  ;;  %v830_v22 = vmax.f32 %v828_v32, %v829_v57  ;;  %v990_v21 = vmax.f32 %v988_v53, %v989_v50 }
 0x1c5   : > { %v976_v55 = vmax.f32 %v2149_v46, %v975_v25  ;;  %v1028_v16 = vsel %vm1007_vm7, %v958_v35, %v1027_v44  ;;  %v806_v7 = vrot.slane %v805_v38, 1  ;;  %v1006_v60 = vsel %vm1005_vm12, %v789_v41, %v1004_v13 }
 0x1c6   : > { %v984_v63 = vrot.slane %v983_v56, 1  ;;  %v1029_v39 = vsel %vm1009_vm14, %v967_v0, %v1028_v16  ;;  %v824_v28 = vrot.slane %v823_v43, 1  ;;  %v831_v34 = vrot.slane %v830_v22, 2 }
 0x1c7   : > { %v991_v14 = vrot.slane %v990_v21, 2  ;;  %v1030_v36 = vsel %vm1011_vm13, %v976_v55, %v1029_v39  ;;  %v815_v40 = vrot.slane %v2163_v8, 1  ;;  %v797_v5 = vrot.slane %v2382_v24, 1 }
 0x1c8   : > { %v985_v15 = vmax.f32 %v983_v56, %v984_v63  ;;  %v832_v46 = vmax.f32 %v830_v22, %v831_v34  ;;  %v807_v29 = vmax.f32 %v805_v38, %v806_v7  ;;  %v825_v3 = vmax.f32 %v823_v43, %v824_v28 }
 0x1c9   : > { %v992_v59 = vmax.f32 %v990_v21, %v991_v14  ;;  %v798_v26 = vmax.f32 %v2382_v24, %v797_v5  ;;  %vm1015_vm10 = vcmask 1047559   ;;  %v816_v11 = vmax.f32 %v2163_v8, %v815_v40 }
 0x1ca   : > { %v1031_v25 = vsel %vm1013_vm6, %v985_v15, %v1030_v36  ;;  %v833_v9 = vrot.slane %v832_v46, 1  ;;  %vm1037_vm15 = vcmask 523264  }
 0x1cb   : > { %v993_v1 = vrot.slane %v992_v59, 1  ;;  %v1008_v2 = vsel %vm1007_vm7, %v798_v26, %v1006_v60 }
 0x1cc   : > { %v834_v45 = vmax.f32 %v832_v46, %v833_v9  ;;  %v1010_v42 = vsel %vm1009_vm14, %v807_v29, %v1008_v2 }
 0x1cd   : > { %v994_v51 = vmax.f32 %v992_v59, %v993_v1  ;;  %v1012_v30 = vsel %vm1011_vm13, %v816_v11, %v1010_v42 }
 0x1ce   : > { %v1014_v24 = vsel %vm1013_vm6, %v825_v3, %v1012_v30 }
 0x1cf   : > { %v1032_v37 = vsel %vm1015_vm10, %v994_v51, %v1031_v25  ;;  %v1016_v49 = vsel %vm1015_vm10, %v834_v45, %v1014_v24 }
 0x1d0   : > { %1033 = vrot.lane.b32.xlu0 %v1032_v37, %s1357_s9 }
 0x242   : > { %v1034_v8 = vpop.permute.xlu0 %1033 }
 0x243   : > { %v1036_v58 = vsel %vm2701_vm8, %v1016_v49, %v1034_v8 }
 0x244   : > { %v1038_v18 = vsel %vm1037_vm15, %v1036_v58, 0.0 }
 0x245   : > { %1039 = vst [vmem:[%s207_s13] sm:$0xff] %v1038_v18 }
 0x246   : > { %1304 = shalt.err (!%p1301_p4)
}
 0x247   : > { %s1305_s5 = scalar_lea.hbm %s2446_s22, 128  ;;  %s1309_s8 = scalar_lea.hbm %s2492_s4, 256 }
 0x248   : > { %p1306_p7 = scmp.ne.s32.totalorder %s2446_s22, %s1305_s5  ;;  %p1310_p10 = scmp.lt.u32.totalorder %s2446_s22, %s2492_s4 }
 0x249   : > { %p1311_p11 = scmp.lt.u32.totalorder %s1309_s8, %s1305_s5  ;;  %p1313_p13 = scmp.lt.u32.totalorder %s1305_s5, %s2446_s22 }
 0x24a   : > { %p1307_p8 = pnand %p1306_p7, %p1422_p5 }
 0x24b   : > { %p1312_p12 = por %p1311_p11, %p1310_p10 }
 0x24c   : > { %p1308_p9 = pneg %p1307_p8 }
 0x24d   : > { %p1314_p0 = por %p1313_p13, %p1312_p12 }
 0x24f   : > { %p1315_p1 = pnand %p1314_p0, %p1308_p9 }
 0x251   : > { %1318 = shalt.err (!%p1315_p1)
}
 0x252   : > { %1239 = dma.vmem_to_hbm [thread:$0]  (%p1422_p5), %s2448_s14, 128, %s2446_s22, %s1041_s27  }
 0x253 PF: > { %p1245_p2 = scmp.ge.s32.totalorder %s1353_s18, 2  ;;  %s1066_s11 = sand.u32 1, %s1341_s15  }
 0x254   : > { %s1067_s12 = scalar_lea.sflag [#allocation3], %s1066_s11 }
 0x255   : > { %p1242_p3 = pnand %p1245_p2, %p1426_p6 }
 0x257   : > { %1336 = dma.done.wait (!%p1242_p3), %s1067_s12, 128  }
 0x258   : > { %1338 = vsyncadd (!%p1242_p3), %s1067_s12, 4294967168  ;;  %p14_p4 = scmp.ge.s32.totalorder %s1409_s21, 4   ;;  %s2702_s15 = smov %s1345_s16 }
 0x259   : > { %s2703_s16 = smov %s1349_s17  ;;  %s2704_s17 = smov %s1420_s24 }
 0x25a   : > { %s2705_s18 = smov %s1409_s21  ;;  %16 = sbr.rel (!%p14_p4) target bundleno = 3 (0x3), region = 74 }
 0x261   :  { %1072 = vsyncpa [#allocation3], 1 }
 0x262   :  { %1074 = vsyncpa [#allocation3 + $0x1], 1 }

</bundles_post_ra>
